<compile_context>
chip_gen: v6e
topology: v6e:2x2x1
jax: 0.10.0
libtpu: 0.0.40
codegen_flags: <defaults>
</compile_context>

<pallas_src>
import functools

import jax
import jax.numpy as jnp
from jax import lax
from jax.experimental import pallas as pl
from jax.experimental.pallas import tpu as pltpu

EPS = 1e-5


def _resblock_kernel(W, ext, cdt, x_ref, w1_ref, w2_ref, out_ref, ext_ref):
    """Fused ResBlock forward for one batch element.

    Layout: (C, H*W) slabs -- channels on sublanes, flattened spatial on lanes.
    `ext_ref` is a zero-haloed copy of the current slab (compute dtype) so every
    3x3 tap is a static lane-shifted slice feeding an accumulating MXU matmul.
    """
    C, HW = x_ref.shape
    x = x_ref[...]                                        # (C, HW) f32

    # Zero only the two lane halos; the interior is always fully overwritten.
    halo = jnp.zeros((C, ext), cdt)
    ext_ref[:, :ext] = halo
    ext_ref[:, ext + HW:] = halo

    # Channel-invariant row-wrap masks, generated on-chip (no HBM traffic).
    col = lax.broadcasted_iota(jnp.int32, (1, HW), 1) % W
    keep_l = jnp.broadcast_to(col != 0, (C, HW))          # kills wrap for dx = -1
    keep_r = jnp.broadcast_to(col != (W - 1), (C, HW))    # kills wrap for dx = +1

    def conv3x3(w_ref):
        # 9 accumulating (C, C) @ (C, HW) matmuls; f32 accumulation on the MXU.
        acc = jnp.zeros((C, HW), jnp.float32)
        t = 0
        for dy in (-1, 0, 1):
            for dx in (-1, 0, 1):
                s = dy * W + dx
                slab = ext_ref[:, ext + s:ext + s + HW]   # (C, HW), static lane shift
                if dx == -1:
                    slab = jnp.where(keep_l, slab, 0)
                elif dx == 1:
                    slab = jnp.where(keep_r, slab, 0)
                acc = acc + lax.dot_general(
                    w_ref[t], slab, (((1,), (0,)), ((), ())),
                    preferred_element_type=jnp.float32)
                t += 1
        return acc

    def instance_norm(h):   # PyTorch InstanceNorm2d: biased variance, no affine.
        mean = jnp.mean(h, axis=1, keepdims=True)
        hc = h - mean
        var = jnp.mean(hc * hc, axis=1, keepdims=True)
        return hc * lax.rsqrt(var + EPS)

    # Conv2dBlock #1 (bias dropped: exactly cancelled by InstanceNorm) + IN + ReLU.
    ext_ref[:, ext:ext + HW] = x.astype(cdt)
    h = jnp.maximum(instance_norm(conv3x3(w1_ref)), 0.0)

    # Conv2dBlock #2 + IN, then residual add.
    ext_ref[:, ext:ext + HW] = h.astype(cdt)
    h = instance_norm(conv3x3(w2_ref))
    out_ref[...] = (h + x).astype(out_ref.dtype)


def res_block(x_nchw, params, *, compute_dtype=jnp.bfloat16):
    """ResBlock forward. x_nchw: (N, C, H, W) float32, PyTorch layout."""
    N, C, H, W = x_nchw.shape
    HW = H * W
    ext = max(128, ((W + 1 + 127) // 128) * 128)   # lane halo, 128-aligned, >= W+1

    x2 = x_nchw.reshape(N, C, HW)                  # free reshape (NCHW contiguous)

    # Pack OIHW conv weights as (9, Cout, Cin), tap t = ky*3 + kx, in compute dtype.
    # Biases are NOT passed: bias before a no-affine InstanceNorm is mathematically dead.
    def pack(w):
        return jnp.transpose(w, (2, 3, 0, 1)).reshape(9, C, C).astype(compute_dtype)

    w1 = pack(params['w1'])
    w2 = pack(params['w2'])

    # VMEM budget from actual residents: x/out blocks (double-buffered), halo slab,
    # weights (double-buffered), plus headroom for the h / acc temporaries.
    cbytes = jnp.dtype(compute_dtype).itemsize
    slab_f32 = C * HW * 4
    resident = (2 * 2 * slab_f32                    # x + out, double-buffered
                + C * (HW + 2 * ext) * cbytes       # halo scratch
                + 2 * 2 * 9 * C * C * cbytes        # w1 + w2, double-buffered
                + 4 * slab_f32)                     # h / acc temporaries
    vmem_limit = int(min(64 * 2**20, max(32 * 2**20, 2 * resident)))

    kernel = functools.partial(_resblock_kernel, W, ext, compute_dtype)
    wspec = pl.BlockSpec((9, C, C), lambda n: (0, 0, 0))

    out2 = pl.pallas_call(
        kernel,
        out_shape=jax.ShapeDtypeStruct((N, C, HW), jnp.float32),
        grid=(N,),
        in_specs=[
            pl.BlockSpec((None, C, HW), lambda n: (n, 0, 0)),   # x (per-sample slab)
            wspec,                                              # w1 (9, Cout, Cin)
            wspec,                                              # w2 (9, Cout, Cin)
        ],
        out_specs=pl.BlockSpec((None, C, HW), lambda n: (n, 0, 0)),
        scratch_shapes=[
            pltpu.VMEM((C, HW + 2 * ext), compute_dtype),       # zero-haloed slab
        ],
        compiler_params=pltpu.CompilerParams(
            dimension_semantics=("parallel",),                  # batch across TCs on v7x
            vmem_limit_bytes=vmem_limit),
    )(x2, w1, w2)

    return out2.reshape(N, C, H, W)


# -----------------------------------------------------------------------------
# Pure-JAX reference (correctness check), matches the PyTorch module exactly.
# -----------------------------------------------------------------------------
def reference(x, params, eps=EPS):
    dn = ('NCHW', 'OIHW', 'NCHW')

    def conv(h, w, b):
        y = lax.conv_general_dilated(h, w, window_strides=(1, 1),
                                     padding=((1, 1), (1, 1)),
                                     dimension_numbers=dn,
                                     precision=lax.Precision.HIGHEST)
        return y + b.reshape(1, -1, 1, 1)

    def inorm(h):
        m = jnp.mean(h, axis=(2, 3), keepdims=True)
        v = jnp.mean((h - m) ** 2, axis=(2, 3), keepdims=True)
        return (h - m) * lax.rsqrt(v + eps)

    h = conv(x, params['w1'], params['b1'])
    h = jnp.maximum(inorm(h), 0.0)
    h = conv(h, params['w2'], params['b2'])
    h = inorm(h)
    return h + x


if __name__ == "__main__":
    N, dim, H, W = 2, 4, 16, 16

    key = jax.random.PRNGKey(0)
    kx, k1, kb1, k2, kb2 = jax.random.split(key, 5)

    x = jax.random.normal(kx, (N, dim, H, W), dtype=jnp.float32)
    params = {
        'w1': 0.1 * jax.random.normal(k1, (dim, dim, 3, 3), dtype=jnp.float32),  # OIHW
        'b1': 0.1 * jax.random.normal(kb1, (dim,), dtype=jnp.float32),
        'w2': 0.1 * jax.random.normal(k2, (dim, dim, 3, 3), dtype=jnp.float32),
        'b2': 0.1 * jax.random.normal(kb2, (dim,), dtype=jnp.float32),
    }

    ref = jax.block_until_ready(reference(x, params))

    # f32 MXU path: tight numerical check.
    out_f32 = jax.block_until_ready(res_block(x, params, compute_dtype=jnp.float32))
    assert out_f32.shape == (N, dim, H, W), out_f32.shape
    err_f32 = float(jnp.max(jnp.abs(out_f32 - ref)))
    assert jnp.allclose(out_f32, ref, atol=1e-3, rtol=1e-3), err_f32

    # bf16 MXU path (production default): looser check (bf16 operand rounding).
    out_bf16 = jax.block_until_ready(res_block(x, params))
    err_bf16 = float(jnp.max(jnp.abs(out_bf16 - ref)))
    assert jnp.allclose(out_bf16, ref, atol=5e-2, rtol=5e-2), err_bf16

    print("KERNEL_OK")
</pallas_src>

<mosaic_0001>
module attributes {stable_mosaic.version = 11 : i64} {
  func.func @_resblock_kernel(%arg0: i32, %arg1: memref<1x4x256xf32, #tpu.memory_space<vmem>>, %arg2: memref<9x4x4xf32, #tpu.memory_space<vmem>>, %arg3: memref<9x4x4xf32, #tpu.memory_space<vmem>>, %arg4: memref<1x4x256xf32, #tpu.memory_space<vmem>>, %arg5: memref<4x512xf32, #tpu.memory_space<vmem>>) attributes {dimension_semantics = [#tpu.dimension_semantics<parallel>], iteration_bounds = array<i64: 2>, scalar_prefetch = 0 : i64, scratch_operands = 1 : i64, tpu.core_type = #tpu.core_type<tc>, window_params = [{transform_indices = @transform_0, window_bounds = array<i64: 1, 4, 256>}, {pipeline_mode = #tpu.pipeline_mode<synchronous>, transform_indices = @transform_1, window_bounds = array<i64: 9, 4, 4>}, {pipeline_mode = #tpu.pipeline_mode<synchronous>, transform_indices = @transform_2, window_bounds = array<i64: 9, 4, 4>}, {transform_indices = @transform_3, window_bounds = array<i64: 1, 4, 256>}]} {
    %c0 = arith.constant 0 : index
    %c0_0 = arith.constant 0 : index
    %c0_1 = arith.constant 0 : index
    %0 = vector.load %arg1[%c0, %c0_0, %c0_1] : memref<1x4x256xf32, #tpu.memory_space<vmem>>, vector<1x4x256xf32>
    %1 = vector.shape_cast %0 : vector<1x4x256xf32> to vector<4x256xf32>
    %cst = arith.constant 0.000000e+00 : f32
    %2 = vector.broadcast %cst : f32 to vector<4x128xf32>
    %c0_2 = arith.constant 0 : index
    %c0_3 = arith.constant 0 : index
    %3 = vector.load %arg5[%c0_2, %c0_3] : memref<4x512xf32, #tpu.memory_space<vmem>>, vector<4x128xf32>
    tpu.vector_store %arg5[%c0_2, %c0_3], %2 {strides = array<i32>} : memref<4x512xf32, #tpu.memory_space<vmem>>, vector<4x128xf32>,
    %c0_4 = arith.constant 0 : index
    %c384 = arith.constant 384 : index
    %4 = vector.load %arg5[%c0_4, %c384] : memref<4x512xf32, #tpu.memory_space<vmem>>, vector<4x128xf32>
    tpu.vector_store %arg5[%c0_4, %c384], %2 {strides = array<i32>} : memref<4x512xf32, #tpu.memory_space<vmem>>, vector<4x128xf32>,
    %5 = tpu.iota {dimensions = array<i32: 1>} : vector<1x256xi32>
    %c16_i32 = arith.constant 16 : i32
    %c0_i32 = arith.constant 0 : i32
    %6 = arith.cmpi eq, %c16_i32, %c0_i32 : i32
    %c1_i32 = arith.constant 1 : i32
    %7 = arith.select %6, %c1_i32, %c16_i32 : i32
    %8 = vector.broadcast %7 : i32 to vector<1x256xi32>
    %9 = arith.remsi %5, %8 : vector<1x256xi32>
    %c0_i32_5 = arith.constant 0 : i32
    %10 = vector.broadcast %c0_i32_5 : i32 to vector<1x256xi32>
    %11 = arith.cmpi ne, %9, %10 : vector<1x256xi32>
    %c0_i32_6 = arith.constant 0 : i32
    %12 = vector.broadcast %c0_i32_6 : i32 to vector<1x256xi32>
    %13 = arith.cmpi slt, %9, %12 : vector<1x256xi32>
    %c0_i32_7 = arith.constant 0 : i32
    %14 = arith.cmpi slt, %7, %c0_i32_7 : i32
    %15 = vector.broadcast %14 : i1 to vector<1x256xi1>
    %16 = vector.broadcast %15 : vector<1x256xi1> to vector<1x256xi1>
    %17 = arith.xori %13, %16 : vector<1x256xi1>
    %18 = arith.andi %17, %11 : vector<1x256xi1>
    %19 = vector.broadcast %7 : i32 to vector<1x256xi32>
    %20 = arith.addi %9, %19 : vector<1x256xi32>
    %21 = arith.select %18, %20, %9 : vector<1x256xi1>, vector<1x256xi32>
    %c0_i32_8 = arith.constant 0 : i32
    %22 = vector.broadcast %c0_i32_8 : i32 to vector<1x256xi32>
    %23 = arith.cmpi ne, %21, %22 : vector<1x256xi32>
    %24 = vector.shape_cast %23 : vector<1x256xi1> to vector<1x256xi1>
    %25 = vector.broadcast %24 : vector<1x256xi1> to vector<4x256xi1>
    %c15_i32 = arith.constant 15 : i32
    %26 = vector.broadcast %c15_i32 : i32 to vector<1x256xi32>
    %27 = arith.cmpi ne, %21, %26 : vector<1x256xi32>
    %28 = vector.shape_cast %27 : vector<1x256xi1> to vector<1x256xi1>
    %29 = vector.broadcast %28 : vector<1x256xi1> to vector<4x256xi1>
    %c0_9 = arith.constant 0 : index
    %c128 = arith.constant 128 : index
    %30 = vector.load %arg5[%c0_9, %c128] : memref<4x512xf32, #tpu.memory_space<vmem>>, vector<4x256xf32>
    tpu.vector_store %arg5[%c0_9, %c128], %1 {strides = array<i32>} : memref<4x512xf32, #tpu.memory_space<vmem>>, vector<4x256xf32>,
    %cst_10 = arith.constant 0.000000e+00 : f32
    %31 = vector.broadcast %cst_10 : f32 to vector<4x256xf32>
    %c0_11 = arith.constant 0 : index
    %c111 = arith.constant 111 : index
    %32 = vector.load %arg5[%c0_11, %c111] : memref<4x512xf32, #tpu.memory_space<vmem>>, vector<4x256xf32>
    %c0_i32_12 = arith.constant 0 : i32
    %33 = arith.sitofp %c0_i32_12 : i32 to f32
    %34 = vector.broadcast %33 : f32 to vector<4x256xf32>
    %35 = arith.select %25, %32, %34 : vector<4x256xi1>, vector<4x256xf32>
    %c0_13 = arith.constant 0 : index
    %c0_14 = arith.constant 0 : index
    %c0_15 = arith.constant 0 : index
    %36 = vector.load %arg2[%c0_13, %c0_14, %c0_15] : memref<9x4x4xf32, #tpu.memory_space<vmem>>, vector<1x4x4xf32>
    %37 = vector.shape_cast %36 : vector<1x4x4xf32> to vector<4x4xf32>
    %cst_16 = arith.constant dense<0.000000e+00> : vector<4x256xf32>
    %38 = tpu.matmul %37, %35, %cst_16 {dimension_numbers = #tpu.dot_dimension_numbers<[1], [0], [0], [1], [0, 0, 1, 1], [], []>} : vector<4x4xf32>, vector<4x256xf32>, vector<4x256xf32> -> vector<4x256xf32>
    %39 = arith.addf %31, %38 : vector<4x256xf32>
    %c0_17 = arith.constant 0 : index
    %c112 = arith.constant 112 : index
    %40 = vector.load %arg5[%c0_17, %c112] : memref<4x512xf32, #tpu.memory_space<vmem>>, vector<4x256xf32>
    %c1 = arith.constant 1 : index
    %c0_18 = arith.constant 0 : index
    %c0_19 = arith.constant 0 : index
    %41 = vector.load %arg2[%c1, %c0_18, %c0_19] : memref<9x4x4xf32, #tpu.memory_space<vmem>>, vector<1x4x4xf32>
    %42 = vector.shape_cast %41 : vector<1x4x4xf32> to vector<4x4xf32>
    %cst_20 = arith.constant dense<0.000000e+00> : vector<4x256xf32>
    %43 = tpu.matmul %42, %40, %cst_20 {dimension_numbers = #tpu.dot_dimension_numbers<[1], [0], [0], [1], [0, 0, 1, 1], [], []>} : vector<4x4xf32>, vector<4x256xf32>, vector<4x256xf32> -> vector<4x256xf32>
    %44 = arith.addf %39, %43 : vector<4x256xf32>
    %c0_21 = arith.constant 0 : index
    %c113 = arith.constant 113 : index
    %45 = vector.load %arg5[%c0_21, %c113] : memref<4x512xf32, #tpu.memory_space<vmem>>, vector<4x256xf32>
    %c0_i32_22 = arith.constant 0 : i32
    %46 = arith.sitofp %c0_i32_22 : i32 to f32
    %47 = vector.broadcast %46 : f32 to vector<4x256xf32>
    %48 = arith.select %29, %45, %47 : vector<4x256xi1>, vector<4x256xf32>
    %c2 = arith.constant 2 : index
    %c0_23 = arith.constant 0 : index
    %c0_24 = arith.constant 0 : index
    %49 = vector.load %arg2[%c2, %c0_23, %c0_24] : memref<9x4x4xf32, #tpu.memory_space<vmem>>, vector<1x4x4xf32>
    %50 = vector.shape_cast %49 : vector<1x4x4xf32> to vector<4x4xf32>
    %cst_25 = arith.constant dense<0.000000e+00> : vector<4x256xf32>
    %51 = tpu.matmul %50, %48, %cst_25 {dimension_numbers = #tpu.dot_dimension_numbers<[1], [0], [0], [1], [0, 0, 1, 1], [], []>} : vector<4x4xf32>, vector<4x256xf32>, vector<4x256xf32> -> vector<4x256xf32>
    %52 = arith.addf %44, %51 : vector<4x256xf32>
    %c0_26 = arith.constant 0 : index
    %c127 = arith.constant 127 : index
    %53 = vector.load %arg5[%c0_26, %c127] : memref<4x512xf32, #tpu.memory_space<vmem>>, vector<4x256xf32>
    %c0_i32_27 = arith.constant 0 : i32
    %54 = arith.sitofp %c0_i32_27 : i32 to f32
    %55 = vector.broadcast %54 : f32 to vector<4x256xf32>
    %56 = arith.select %25, %53, %55 : vector<4x256xi1>, vector<4x256xf32>
    %c3 = arith.constant 3 : index
    %c0_28 = arith.constant 0 : index
    %c0_29 = arith.constant 0 : index
    %57 = vector.load %arg2[%c3, %c0_28, %c0_29] : memref<9x4x4xf32, #tpu.memory_space<vmem>>, vector<1x4x4xf32>
    %58 = vector.shape_cast %57 : vector<1x4x4xf32> to vector<4x4xf32>
    %cst_30 = arith.constant dense<0.000000e+00> : vector<4x256xf32>
    %59 = tpu.matmul %58, %56, %cst_30 {dimension_numbers = #tpu.dot_dimension_numbers<[1], [0], [0], [1], [0, 0, 1, 1], [], []>} : vector<4x4xf32>, vector<4x256xf32>, vector<4x256xf32> -> vector<4x256xf32>
    %60 = arith.addf %52, %59 : vector<4x256xf32>
    %c0_31 = arith.constant 0 : index
    %c128_32 = arith.constant 128 : index
    %61 = vector.load %arg5[%c0_31, %c128_32] : memref<4x512xf32, #tpu.memory_space<vmem>>, vector<4x256xf32>
    %c4 = arith.constant 4 : index
    %c0_33 = arith.constant 0 : index
    %c0_34 = arith.constant 0 : index
    %62 = vector.load %arg2[%c4, %c0_33, %c0_34] : memref<9x4x4xf32, #tpu.memory_space<vmem>>, vector<1x4x4xf32>
    %63 = vector.shape_cast %62 : vector<1x4x4xf32> to vector<4x4xf32>
    %cst_35 = arith.constant dense<0.000000e+00> : vector<4x256xf32>
    %64 = tpu.matmul %63, %61, %cst_35 {dimension_numbers = #tpu.dot_dimension_numbers<[1], [0], [0], [1], [0, 0, 1, 1], [], []>} : vector<4x4xf32>, vector<4x256xf32>, vector<4x256xf32> -> vector<4x256xf32>
    %65 = arith.addf %60, %64 : vector<4x256xf32>
    %c0_36 = arith.constant 0 : index
    %c129 = arith.constant 129 : index
    %66 = vector.load %arg5[%c0_36, %c129] : memref<4x512xf32, #tpu.memory_space<vmem>>, vector<4x256xf32>
    %c0_i32_37 = arith.constant 0 : i32
    %67 = arith.sitofp %c0_i32_37 : i32 to f32
    %68 = vector.broadcast %67 : f32 to vector<4x256xf32>
    %69 = arith.select %29, %66, %68 : vector<4x256xi1>, vector<4x256xf32>
    %c5 = arith.constant 5 : index
    %c0_38 = arith.constant 0 : index
    %c0_39 = arith.constant 0 : index
    %70 = vector.load %arg2[%c5, %c0_38, %c0_39] : memref<9x4x4xf32, #tpu.memory_space<vmem>>, vector<1x4x4xf32>
    %71 = vector.shape_cast %70 : vector<1x4x4xf32> to vector<4x4xf32>
    %cst_40 = arith.constant dense<0.000000e+00> : vector<4x256xf32>
    %72 = tpu.matmul %71, %69, %cst_40 {dimension_numbers = #tpu.dot_dimension_numbers<[1], [0], [0], [1], [0, 0, 1, 1], [], []>} : vector<4x4xf32>, vector<4x256xf32>, vector<4x256xf32> -> vector<4x256xf32>
    %73 = arith.addf %65, %72 : vector<4x256xf32>
    %c0_41 = arith.constant 0 : index
    %c143 = arith.constant 143 : index
    %74 = vector.load %arg5[%c0_41, %c143] : memref<4x512xf32, #tpu.memory_space<vmem>>, vector<4x256xf32>
    %c0_i32_42 = arith.constant 0 : i32
    %75 = arith.sitofp %c0_i32_42 : i32 to f32
    %76 = vector.broadcast %75 : f32 to vector<4x256xf32>
    %77 = arith.select %25, %74, %76 : vector<4x256xi1>, vector<4x256xf32>
    %c6 = arith.constant 6 : index
    %c0_43 = arith.constant 0 : index
    %c0_44 = arith.constant 0 : index
    %78 = vector.load %arg2[%c6, %c0_43, %c0_44] : memref<9x4x4xf32, #tpu.memory_space<vmem>>, vector<1x4x4xf32>
    %79 = vector.shape_cast %78 : vector<1x4x4xf32> to vector<4x4xf32>
    %cst_45 = arith.constant dense<0.000000e+00> : vector<4x256xf32>
    %80 = tpu.matmul %79, %77, %cst_45 {dimension_numbers = #tpu.dot_dimension_numbers<[1], [0], [0], [1], [0, 0, 1, 1], [], []>} : vector<4x4xf32>, vector<4x256xf32>, vector<4x256xf32> -> vector<4x256xf32>
    %81 = arith.addf %73, %80 : vector<4x256xf32>
    %c0_46 = arith.constant 0 : index
    %c144 = arith.constant 144 : index
    %82 = vector.load %arg5[%c0_46, %c144] : memref<4x512xf32, #tpu.memory_space<vmem>>, vector<4x256xf32>
    %c7 = arith.constant 7 : index
    %c0_47 = arith.constant 0 : index
    %c0_48 = arith.constant 0 : index
    %83 = vector.load %arg2[%c7, %c0_47, %c0_48] : memref<9x4x4xf32, #tpu.memory_space<vmem>>, vector<1x4x4xf32>
    %84 = vector.shape_cast %83 : vector<1x4x4xf32> to vector<4x4xf32>
    %cst_49 = arith.constant dense<0.000000e+00> : vector<4x256xf32>
    %85 = tpu.matmul %84, %82, %cst_49 {dimension_numbers = #tpu.dot_dimension_numbers<[1], [0], [0], [1], [0, 0, 1, 1], [], []>} : vector<4x4xf32>, vector<4x256xf32>, vector<4x256xf32> -> vector<4x256xf32>
    %86 = arith.addf %81, %85 : vector<4x256xf32>
    %c0_50 = arith.constant 0 : index
    %c145 = arith.constant 145 : index
    %87 = vector.load %arg5[%c0_50, %c145] : memref<4x512xf32, #tpu.memory_space<vmem>>, vector<4x256xf32>
    %c0_i32_51 = arith.constant 0 : i32
    %88 = arith.sitofp %c0_i32_51 : i32 to f32
    %89 = vector.broadcast %88 : f32 to vector<4x256xf32>
    %90 = arith.select %29, %87, %89 : vector<4x256xi1>, vector<4x256xf32>
    %c8 = arith.constant 8 : index
    %c0_52 = arith.constant 0 : index
    %c0_53 = arith.constant 0 : index
    %91 = vector.load %arg2[%c8, %c0_52, %c0_53] : memref<9x4x4xf32, #tpu.memory_space<vmem>>, vector<1x4x4xf32>
    %92 = vector.shape_cast %91 : vector<1x4x4xf32> to vector<4x4xf32>
    %cst_54 = arith.constant dense<0.000000e+00> : vector<4x256xf32>
    %93 = tpu.matmul %92, %90, %cst_54 {dimension_numbers = #tpu.dot_dimension_numbers<[1], [0], [0], [1], [0, 0, 1, 1], [], []>} : vector<4x4xf32>, vector<4x256xf32>, vector<4x256xf32> -> vector<4x256xf32>
    %94 = arith.addf %86, %93 : vector<4x256xf32>
    %cst_55 = arith.constant dense<0.000000e+00> : vector<4xf32>
    %95 = vector.multi_reduction <add>, %94, %cst_55 [1] : vector<4x256xf32> to vector<4xf32>
    %96 = vector.shape_cast %95 : vector<4xf32> to vector<4x1xf32>
    %cst_56 = arith.constant 2.560000e+02 : f32
    %97 = vector.broadcast %cst_56 : f32 to vector<4x1xf32>
    %98 = arith.divf %96, %97 : vector<4x1xf32>
    %99 = vector.broadcast %98 : vector<4x1xf32> to vector<4x256xf32>
    %100 = arith.subf %94, %99 : vector<4x256xf32>
    %101 = arith.mulf %100, %100 : vector<4x256xf32>
    %cst_57 = arith.constant dense<0.000000e+00> : vector<4xf32>
    %102 = vector.multi_reduction <add>, %101, %cst_57 [1] : vector<4x256xf32> to vector<4xf32>
    %103 = vector.shape_cast %102 : vector<4xf32> to vector<4x1xf32>
    %cst_58 = arith.constant 2.560000e+02 : f32
    %104 = vector.broadcast %cst_58 : f32 to vector<4x1xf32>
    %105 = arith.divf %103, %104 : vector<4x1xf32>
    %cst_59 = arith.constant 9.99999974E-6 : f32
    %106 = vector.broadcast %cst_59 : f32 to vector<4x1xf32>
    %107 = arith.addf %105, %106 : vector<4x1xf32>
    %108 = math.rsqrt %107 : vector<4x1xf32>
    %109 = vector.broadcast %108 : vector<4x1xf32> to vector<4x256xf32>
    %110 = arith.mulf %100, %109 : vector<4x256xf32>
    %cst_60 = arith.constant 0.000000e+00 : f32
    %111 = vector.broadcast %cst_60 : f32 to vector<4x256xf32>
    %112 = arith.maximumf %110, %111 : vector<4x256xf32>
    %c0_61 = arith.constant 0 : index
    %c128_62 = arith.constant 128 : index
    %113 = vector.load %arg5[%c0_61, %c128_62] : memref<4x512xf32, #tpu.memory_space<vmem>>, vector<4x256xf32>
    tpu.vector_store %arg5[%c0_61, %c128_62], %112 {strides = array<i32>} : memref<4x512xf32, #tpu.memory_space<vmem>>, vector<4x256xf32>,
    %cst_63 = arith.constant 0.000000e+00 : f32
    %114 = vector.broadcast %cst_63 : f32 to vector<4x256xf32>
    %c0_64 = arith.constant 0 : index
    %c111_65 = arith.constant 111 : index
    %115 = vector.load %arg5[%c0_64, %c111_65] : memref<4x512xf32, #tpu.memory_space<vmem>>, vector<4x256xf32>
    %c0_i32_66 = arith.constant 0 : i32
    %116 = arith.sitofp %c0_i32_66 : i32 to f32
    %117 = vector.broadcast %116 : f32 to vector<4x256xf32>
    %118 = arith.select %25, %115, %117 : vector<4x256xi1>, vector<4x256xf32>
    %c0_67 = arith.constant 0 : index
    %c0_68 = arith.constant 0 : index
    %c0_69 = arith.constant 0 : index
    %119 = vector.load %arg3[%c0_67, %c0_68, %c0_69] : memref<9x4x4xf32, #tpu.memory_space<vmem>>, vector<1x4x4xf32>
    %120 = vector.shape_cast %119 : vector<1x4x4xf32> to vector<4x4xf32>
    %cst_70 = arith.constant dense<0.000000e+00> : vector<4x256xf32>
    %121 = tpu.matmul %120, %118, %cst_70 {dimension_numbers = #tpu.dot_dimension_numbers<[1], [0], [0], [1], [0, 0, 1, 1], [], []>} : vector<4x4xf32>, vector<4x256xf32>, vector<4x256xf32> -> vector<4x256xf32>
    %122 = arith.addf %114, %121 : vector<4x256xf32>
    %c0_71 = arith.constant 0 : index
    %c112_72 = arith.constant 112 : index
    %123 = vector.load %arg5[%c0_71, %c112_72] : memref<4x512xf32, #tpu.memory_space<vmem>>, vector<4x256xf32>
    %c1_73 = arith.constant 1 : index
    %c0_74 = arith.constant 0 : index
    %c0_75 = arith.constant 0 : index
    %124 = vector.load %arg3[%c1_73, %c0_74, %c0_75] : memref<9x4x4xf32, #tpu.memory_space<vmem>>, vector<1x4x4xf32>
    %125 = vector.shape_cast %124 : vector<1x4x4xf32> to vector<4x4xf32>
    %cst_76 = arith.constant dense<0.000000e+00> : vector<4x256xf32>
    %126 = tpu.matmul %125, %123, %cst_76 {dimension_numbers = #tpu.dot_dimension_numbers<[1], [0], [0], [1], [0, 0, 1, 1], [], []>} : vector<4x4xf32>, vector<4x256xf32>, vector<4x256xf32> -> vector<4x256xf32>
    %127 = arith.addf %122, %126 : vector<4x256xf32>
    %c0_77 = arith.constant 0 : index
    %c113_78 = arith.constant 113 : index
    %128 = vector.load %arg5[%c0_77, %c113_78] : memref<4x512xf32, #tpu.memory_space<vmem>>, vector<4x256xf32>
    %c0_i32_79 = arith.constant 0 : i32
    %129 = arith.sitofp %c0_i32_79 : i32 to f32
    %130 = vector.broadcast %129 : f32 to vector<4x256xf32>
    %131 = arith.select %29, %128, %130 : vector<4x256xi1>, vector<4x256xf32>
    %c2_80 = arith.constant 2 : index
    %c0_81 = arith.constant 0 : index
    %c0_82 = arith.constant 0 : index
    %132 = vector.load %arg3[%c2_80, %c0_81, %c0_82] : memref<9x4x4xf32, #tpu.memory_space<vmem>>, vector<1x4x4xf32>
    %133 = vector.shape_cast %132 : vector<1x4x4xf32> to vector<4x4xf32>
    %cst_83 = arith.constant dense<0.000000e+00> : vector<4x256xf32>
    %134 = tpu.matmul %133, %131, %cst_83 {dimension_numbers = #tpu.dot_dimension_numbers<[1], [0], [0], [1], [0, 0, 1, 1], [], []>} : vector<4x4xf32>, vector<4x256xf32>, vector<4x256xf32> -> vector<4x256xf32>
    %135 = arith.addf %127, %134 : vector<4x256xf32>
    %c0_84 = arith.constant 0 : index
    %c127_85 = arith.constant 127 : index
    %136 = vector.load %arg5[%c0_84, %c127_85] : memref<4x512xf32, #tpu.memory_space<vmem>>, vector<4x256xf32>
    %c0_i32_86 = arith.constant 0 : i32
    %137 = arith.sitofp %c0_i32_86 : i32 to f32
    %138 = vector.broadcast %137 : f32 to vector<4x256xf32>
    %139 = arith.select %25, %136, %138 : vector<4x256xi1>, vector<4x256xf32>
    %c3_87 = arith.constant 3 : index
    %c0_88 = arith.constant 0 : index
    %c0_89 = arith.constant 0 : index
    %140 = vector.load %arg3[%c3_87, %c0_88, %c0_89] : memref<9x4x4xf32, #tpu.memory_space<vmem>>, vector<1x4x4xf32>
    %141 = vector.shape_cast %140 : vector<1x4x4xf32> to vector<4x4xf32>
    %cst_90 = arith.constant dense<0.000000e+00> : vector<4x256xf32>
    %142 = tpu.matmul %141, %139, %cst_90 {dimension_numbers = #tpu.dot_dimension_numbers<[1], [0], [0], [1], [0, 0, 1, 1], [], []>} : vector<4x4xf32>, vector<4x256xf32>, vector<4x256xf32> -> vector<4x256xf32>
    %143 = arith.addf %135, %142 : vector<4x256xf32>
    %c0_91 = arith.constant 0 : index
    %c128_92 = arith.constant 128 : index
    %144 = vector.load %arg5[%c0_91, %c128_92] : memref<4x512xf32, #tpu.memory_space<vmem>>, vector<4x256xf32>
    %c4_93 = arith.constant 4 : index
    %c0_94 = arith.constant 0 : index
    %c0_95 = arith.constant 0 : index
    %145 = vector.load %arg3[%c4_93, %c0_94, %c0_95] : memref<9x4x4xf32, #tpu.memory_space<vmem>>, vector<1x4x4xf32>
    %146 = vector.shape_cast %145 : vector<1x4x4xf32> to vector<4x4xf32>
    %cst_96 = arith.constant dense<0.000000e+00> : vector<4x256xf32>
    %147 = tpu.matmul %146, %144, %cst_96 {dimension_numbers = #tpu.dot_dimension_numbers<[1], [0], [0], [1], [0, 0, 1, 1], [], []>} : vector<4x4xf32>, vector<4x256xf32>, vector<4x256xf32> -> vector<4x256xf32>
    %148 = arith.addf %143, %147 : vector<4x256xf32>
    %c0_97 = arith.constant 0 : index
    %c129_98 = arith.constant 129 : index
    %149 = vector.load %arg5[%c0_97, %c129_98] : memref<4x512xf32, #tpu.memory_space<vmem>>, vector<4x256xf32>
    %c0_i32_99 = arith.constant 0 : i32
    %150 = arith.sitofp %c0_i32_99 : i32 to f32
    %151 = vector.broadcast %150 : f32 to vector<4x256xf32>
    %152 = arith.select %29, %149, %151 : vector<4x256xi1>, vector<4x256xf32>
    %c5_100 = arith.constant 5 : index
    %c0_101 = arith.constant 0 : index
    %c0_102 = arith.constant 0 : index
    %153 = vector.load %arg3[%c5_100, %c0_101, %c0_102] : memref<9x4x4xf32, #tpu.memory_space<vmem>>, vector<1x4x4xf32>
    %154 = vector.shape_cast %153 : vector<1x4x4xf32> to vector<4x4xf32>
    %cst_103 = arith.constant dense<0.000000e+00> : vector<4x256xf32>
    %155 = tpu.matmul %154, %152, %cst_103 {dimension_numbers = #tpu.dot_dimension_numbers<[1], [0], [0], [1], [0, 0, 1, 1], [], []>} : vector<4x4xf32>, vector<4x256xf32>, vector<4x256xf32> -> vector<4x256xf32>
    %156 = arith.addf %148, %155 : vector<4x256xf32>
    %c0_104 = arith.constant 0 : index
    %c143_105 = arith.constant 143 : index
    %157 = vector.load %arg5[%c0_104, %c143_105] : memref<4x512xf32, #tpu.memory_space<vmem>>, vector<4x256xf32>
    %c0_i32_106 = arith.constant 0 : i32
    %158 = arith.sitofp %c0_i32_106 : i32 to f32
    %159 = vector.broadcast %158 : f32 to vector<4x256xf32>
    %160 = arith.select %25, %157, %159 : vector<4x256xi1>, vector<4x256xf32>
    %c6_107 = arith.constant 6 : index
    %c0_108 = arith.constant 0 : index
    %c0_109 = arith.constant 0 : index
    %161 = vector.load %arg3[%c6_107, %c0_108, %c0_109] : memref<9x4x4xf32, #tpu.memory_space<vmem>>, vector<1x4x4xf32>
    %162 = vector.shape_cast %161 : vector<1x4x4xf32> to vector<4x4xf32>
    %cst_110 = arith.constant dense<0.000000e+00> : vector<4x256xf32>
    %163 = tpu.matmul %162, %160, %cst_110 {dimension_numbers = #tpu.dot_dimension_numbers<[1], [0], [0], [1], [0, 0, 1, 1], [], []>} : vector<4x4xf32>, vector<4x256xf32>, vector<4x256xf32> -> vector<4x256xf32>
    %164 = arith.addf %156, %163 : vector<4x256xf32>
    %c0_111 = arith.constant 0 : index
    %c144_112 = arith.constant 144 : index
    %165 = vector.load %arg5[%c0_111, %c144_112] : memref<4x512xf32, #tpu.memory_space<vmem>>, vector<4x256xf32>
    %c7_113 = arith.constant 7 : index
    %c0_114 = arith.constant 0 : index
    %c0_115 = arith.constant 0 : index
    %166 = vector.load %arg3[%c7_113, %c0_114, %c0_115] : memref<9x4x4xf32, #tpu.memory_space<vmem>>, vector<1x4x4xf32>
    %167 = vector.shape_cast %166 : vector<1x4x4xf32> to vector<4x4xf32>
    %cst_116 = arith.constant dense<0.000000e+00> : vector<4x256xf32>
    %168 = tpu.matmul %167, %165, %cst_116 {dimension_numbers = #tpu.dot_dimension_numbers<[1], [0], [0], [1], [0, 0, 1, 1], [], []>} : vector<4x4xf32>, vector<4x256xf32>, vector<4x256xf32> -> vector<4x256xf32>
    %169 = arith.addf %164, %168 : vector<4x256xf32>
    %c0_117 = arith.constant 0 : index
    %c145_118 = arith.constant 145 : index
    %170 = vector.load %arg5[%c0_117, %c145_118] : memref<4x512xf32, #tpu.memory_space<vmem>>, vector<4x256xf32>
    %c0_i32_119 = arith.constant 0 : i32
    %171 = arith.sitofp %c0_i32_119 : i32 to f32
    %172 = vector.broadcast %171 : f32 to vector<4x256xf32>
    %173 = arith.select %29, %170, %172 : vector<4x256xi1>, vector<4x256xf32>
    %c8_120 = arith.constant 8 : index
    %c0_121 = arith.constant 0 : index
    %c0_122 = arith.constant 0 : index
    %174 = vector.load %arg3[%c8_120, %c0_121, %c0_122] : memref<9x4x4xf32, #tpu.memory_space<vmem>>, vector<1x4x4xf32>
    %175 = vector.shape_cast %174 : vector<1x4x4xf32> to vector<4x4xf32>
    %cst_123 = arith.constant dense<0.000000e+00> : vector<4x256xf32>
    %176 = tpu.matmul %175, %173, %cst_123 {dimension_numbers = #tpu.dot_dimension_numbers<[1], [0], [0], [1], [0, 0, 1, 1], [], []>} : vector<4x4xf32>, vector<4x256xf32>, vector<4x256xf32> -> vector<4x256xf32>
    %177 = arith.addf %169, %176 : vector<4x256xf32>
    %cst_124 = arith.constant dense<0.000000e+00> : vector<4xf32>
    %178 = vector.multi_reduction <add>, %177, %cst_124 [1] : vector<4x256xf32> to vector<4xf32>
    %179 = vector.shape_cast %178 : vector<4xf32> to vector<4x1xf32>
    %cst_125 = arith.constant 2.560000e+02 : f32
    %180 = vector.broadcast %cst_125 : f32 to vector<4x1xf32>
    %181 = arith.divf %179, %180 : vector<4x1xf32>
    %182 = vector.broadcast %181 : vector<4x1xf32> to vector<4x256xf32>
    %183 = arith.subf %177, %182 : vector<4x256xf32>
    %184 = arith.mulf %183, %183 : vector<4x256xf32>
    %cst_126 = arith.constant dense<0.000000e+00> : vector<4xf32>
    %185 = vector.multi_reduction <add>, %184, %cst_126 [1] : vector<4x256xf32> to vector<4xf32>
    %186 = vector.shape_cast %185 : vector<4xf32> to vector<4x1xf32>
    %cst_127 = arith.constant 2.560000e+02 : f32
    %187 = vector.broadcast %cst_127 : f32 to vector<4x1xf32>
    %188 = arith.divf %186, %187 : vector<4x1xf32>
    %cst_128 = arith.constant 9.99999974E-6 : f32
    %189 = vector.broadcast %cst_128 : f32 to vector<4x1xf32>
    %190 = arith.addf %188, %189 : vector<4x1xf32>
    %191 = math.rsqrt %190 : vector<4x1xf32>
    %192 = vector.broadcast %191 : vector<4x1xf32> to vector<4x256xf32>
    %193 = arith.mulf %183, %192 : vector<4x256xf32>
    %194 = arith.addf %193, %1 : vector<4x256xf32>
    %c0_129 = arith.constant 0 : index
    %c0_130 = arith.constant 0 : index
    %c0_131 = arith.constant 0 : index
    %195 = vector.load %arg4[%c0_129, %c0_130, %c0_131] : memref<1x4x256xf32, #tpu.memory_space<vmem>>, vector<1x4x256xf32>
    %196 = vector.shape_cast %195 : vector<1x4x256xf32> to vector<4x256xf32>
    %197 = vector.shape_cast %194 : vector<4x256xf32> to vector<1x4x256xf32>
    tpu.vector_store %arg4[%c0_129, %c0_130, %c0_131], %197 {strides = array<i32>} : memref<1x4x256xf32, #tpu.memory_space<vmem>>, vector<1x4x256xf32>,
    return
  }
  func.func @transform_0(%arg0: i32) -> (i32, i32, i32) {
    %c0_i32 = arith.constant 0 : i32
    %c0_i32_0 = arith.constant 0 : i32
    %c0_i32_1 = arith.constant 0 : i32
    return %arg0, %c0_i32, %c0_i32_0 : i32, i32, i32
  }
  func.func @transform_1(%arg0: i32) -> (i32, i32, i32) {
    %c0_i32 = arith.constant 0 : i32
    %c0_i32_0 = arith.constant 0 : i32
    %c0_i32_1 = arith.constant 0 : i32
    %c0_i32_2 = arith.constant 0 : i32
    return %c0_i32, %c0_i32_0, %c0_i32_1 : i32, i32, i32
  }
  func.func @transform_2(%arg0: i32) -> (i32, i32, i32) {
    %c0_i32 = arith.constant 0 : i32
    %c0_i32_0 = arith.constant 0 : i32
    %c0_i32_1 = arith.constant 0 : i32
    %c0_i32_2 = arith.constant 0 : i32
    return %c0_i32, %c0_i32_0, %c0_i32_1 : i32, i32, i32
  }
  func.func @transform_3(%arg0: i32) -> (i32, i32, i32) {
    %c0_i32 = arith.constant 0 : i32
    %c0_i32_0 = arith.constant 0 : i32
    %c0_i32_1 = arith.constant 0 : i32
    return %arg0, %c0_i32, %c0_i32_0 : i32, i32, i32
  }
}

</mosaic_0001>

<bundles_post_ra>
// kernel: tpu_custom_call.1
= control target key start
LH: loop header
LB: loop body
LE: loop exit
PB: predicated region body
PF: predicated region fallthrough
CT: control target
= control target key end

     0   :  { %8 = vsyncpa [#allocation4], 0  ;;  %s2732_s0 = inlined_call_operand.vmem [shape: f32[2,4,256], index: 0, kind: input, shape index: {}]   ;;  %s2733_s1 = inlined_call_operand.vmem [shape: f32[9,4,4], index: 1, kind: input, shape index: {}]   ;;  %s2734_s2 = inlined_call_operand.vmem [shape: f32[9,4,4], index: 2, kind: input, shape index: {}]   ;;  %s2735_s3 = inlined_call_operand.hbm [shape: f32[2,4,256], index: 3, kind: output, shape index: {}]  }
   0x1   :  { %10 = vsyncpa [#allocation4 + $0x1], 0  ;;  %s2328_s12 = smov 0   ;;  %s2330_s13 = smov 0  }
   0x2   :  { %s2332_s14 = smov 0   ;;  %s2334_s15 = smov 0  }
   0x3 LB: > { %s2349_s16 = sadd.s32 4294967295, %s2296_s15   ;;  %s2096_s17 = sadd.s32 4294967294, %s2296_s15   ;;  %s2296_s15 = sphi %s2334_s15, %s2749_s15   ;;  %s2292_s14 = sphi %s2332_s14, %s2748_s14   ;;  %s2288_s13 = sphi %s2330_s13, %s2747_s13   ;;  %s2284_s12 = sphi %s2328_s12, %s2746_s12  }
   0x4   : > { %s2353_s18 = sadd.s32 1, %s2296_s15   ;;  %s91_s19 = sadd.s32 1, %s2292_s14 }
   0x5   : > { %s88_s20 = ssub.s32 %s2296_s15, %s2353_s18  ;;  %p101_p0 = scmp.ne.s32.totalorder %s2292_s14, %s2288_s13 }
   0x6   : > { %p89_p1 = scmp.eq.s32.totalorder %s88_s20, 0  ;;  %p102_p2 = scmp.eq.s32.totalorder %s2349_s16, 1 }
   0x7   : > { %p107_p3 = scmp.ne.s32.totalorder %s2288_s13, %s2284_s12  ;;  %p108_p4 = scmp.eq.s32.totalorder %s2096_s17, 1 }
   0x8   : > { %s2364_s21 = scalar_select %p89_p1, %s2292_s14, %s91_s19  }
   0x9   : > { %p2366_p5 = por %p102_p2, %p101_p0  ;;  %p2370_p6 = por %p108_p4, %p107_p3 }
   0xa   : > { %p2099_p7 = scmp.ge.s32.totalorder %s2296_s15, 1  ;;  %p140_p8 = scmp.lt.s32.totalorder %s2296_s15, 3 }
   0xc   : > { %p141_p9 = pnand %p2099_p7, %p140_p8 }
   0xd   : > { %p164_p10 = scmp.lt.s32.totalorder (!%p141_p9), %s2349_s16, 1  ;;  %s2299_s29 = smov (!%p141_p9), 17  }
   0xe   : > { %144 = sbr.rel (%p141_p9) target bundleno = 1393 (0x571), region = 32  ;;  %s2300_s30 = smov (!%p141_p9), 16  }
   0xf   : > { %s2301_s4 = smov (!%p141_p9), 15   ;;  %s2302_s5 = smov (!%p141_p9), 1  }
  0x10   : > { %s2303_s6 = smov (!%p141_p9), 127   ;;  %s2304_s7 = smov (!%p141_p9), 113  }
  0x11   : > { %s2305_s8 = smov (!%p141_p9), 112   ;;  %s2306_s9 = smov (!%p141_p9), 111  }
  0x13   : > { %v2298_v0 = vmov 0.0   ;;  %s165_s24 = scalar_select %p164_p10, %s2349_s16, 1  ;;  %v172_v12 = vlaneseq  ;;  %vm223_vm0 = vcmask 138240   ;;  %vm239_vm1 = vcmask 130048   ;;  %v2103_v31 = vld [vmem:[%s2733_s1 + $0x4] sm:$0xf] }
  0x14   : > { %170 = vst [vmem:[#allocation2] sm:$0xf] %v2298_v0  ;;  %171 = vst [vmem:[#allocation2 + $0xc] sm:$0xf] %v2298_v0  ;;  %315 = vmatprep.mubr.f32.mxu0 %v2298_v0  ;;  %395 = vmatprep.mubr.f32.mxu1 %v2298_v0  ;;  %vm246_vm2 = vcmask 1043456   ;;  %vm242_vm5 = vcmask 31744  }
  0x15   : > { %s2178_s25 = sshll.u32 %s165_s24, 3  ;;  %v173_v13 = vand.u32 127, %v172_v12  ;;  %vm413_vm6 = vcmask 121856   ;;  %v230_v34 = vld [vmem:[%s2733_s1] sm:$0xf]  ;;  %vm515_vm9 = vcmask 7168  }
  0x16   : > { %s168_s28 = scalar_lea.vmem %s2732_s0, %s2178_s25  ;;  %v2110_v43 = vld [vmem:[%s2733_s1 + $0x8] sm:$0xf]  ;;  %vm702_vm10 = vcmask 1039360   ;;  %v2114_v50 = vld [vmem:[%s2733_s1 + $0xc] sm:$0xf]  ;;  %vm804_vm11 = vcmask 924672  }
  0x17   : > { %v2385_v1 = vld [vmem:[%s168_s28] sm:$0xff]  ;;  %v174_v16 = vadd.s32 128, %v173_v13  ;;  %v179_v20 = vand.u32 15, %v173_v13  ;;  %v2118_v51 = vld [vmem:[%s2733_s1 + $0x10] sm:$0xf]  ;;  %vm908_vm12 = vcmask 916480  }
  0x18   : > { %211 = vst [vmem:[#allocation2 + $0x4] sm:$0xff] %v2385_v1  ;;  %v2402_v7 = vcombine.high %v2385_v1, %v2385_v1  ;;  %v2122_v59 = vld [vmem:[%s2733_s1 + $0x14] sm:$0xf]  ;;  %v2130_v12 = vld [vmem:[%s2733_s1 + $0x1c] sm:$0xf]  ;;  %vm1002_vm13 = vcmask 908288  }
  0x19   : > { %v186_v19 = vand.u32 15, %v174_v16  ;;  %vm2428_vm4 = vcmp.ne.s32.totalorder %v179_v20, 0  ;;  %vm2449_vm7 = vcmp.ne.s32.totalorder %v179_v20, 15  ;;  %v2134_v20 = vld [vmem:[%s2733_s1 + $0x20] sm:$0xf] }
  0x1b   : > { %v692_v8 = vld [vmem:[#allocation2 + $0xc] sm:$0xf]  ;;  %vm2424_vm3 = vcmp.ne.s32.totalorder %v186_v19, 0  ;;  %vm2453_vm8 = vcmp.ne.s32.totalorder %v186_v19, 15 }
  0x1c   : > { %v794_v9 = vld [vmem:[#allocation2 + $0xc] sm:$0xf] }
  0x1d   : > { %v896_v10 = vld [vmem:[#allocation2 + $0xc] sm:$0xf] }
  0x1e   : > { %v992_v11 = vld [vmem:[#allocation2 + $0xc] sm:$0xf] }
  0x1f   : > { %v213_v2 = vld [vmem:[#allocation2 + $0x8] sm:$0xf]  ;;  %v212_v3 = vld [vmem:[#allocation2] sm:$0xff] }
  0x20   : > { %221 = vrot.lane.b32.xlu1 %v213_v2, %s2299_s29  ;;  %237 = vrot.lane.b32.xlu0 %v213_v2, %s2300_s30  ;;  %v403_v4 = vld [vmem:[#allocation2 + $0x8] sm:$0xf]  ;;  %v216_v5 = vcombine.high %v212_v3, %v212_v3 }
  0x21   : > { %v505_v6 = vld [vmem:[#allocation2 + $0x8] sm:$0xf] }
  0x24   : > { %217 = vrot.lane.b32.xlu1 %v212_v3, %s2299_s29  ;;  %233 = vrot.lane.b32.xlu0 %v212_v3, %s2300_s30 }
  0x28   : > { %411 = vrot.lane.b32.xlu1 %v403_v4, %s2301_s4  ;;  %407 = vrot.lane.b32.xlu0 %v212_v3, %s2301_s4 }
  0x2c   : > { %219 = vrot.lane.b32.xlu1 %v216_v5, %s2299_s29  ;;  %235 = vrot.lane.b32.xlu0 %v216_v5, %s2300_s30 }
  0x30   : > { %511 = vrot.lane.b32.xlu1 %v216_v5, %s2302_s5  ;;  %409 = vrot.lane.b32.xlu0 %v216_v5, %s2301_s4  ;;  %v2126_v5 = vld [vmem:[%s2733_s1 + $0x18] sm:$0xf] }
  0x34   : > { %509 = vrot.lane.b32.xlu1 %v212_v3, %s2302_s5  ;;  %513 = vrot.lane.b32.xlu0 %v505_v6, %s2302_s5 }
  0x38   : > { %700 = vrot.lane.b32.xlu1 %v692_v8, %s2303_s6  ;;  %698 = vrot.lane.b32.xlu0 %v2402_v7, %s2303_s6 }
  0x3c   : > { %800 = vrot.lane.b32.xlu1 %v2402_v7, %s2304_s7  ;;  %696 = vrot.lane.b32.xlu0 %v2385_v1, %s2303_s6 }
  0x40   : > { %798 = vrot.lane.b32.xlu1 %v2385_v1, %s2304_s7  ;;  %802 = vrot.lane.b32.xlu0 %v794_v9, %s2304_s7 }
  0x44   : > { %906 = vrot.lane.b32.xlu1 %v896_v10, %s2305_s8  ;;  %904 = vrot.lane.b32.xlu0 %v2402_v7, %s2305_s8 }
  0x48   : > { %998 = vrot.lane.b32.xlu1 %v2402_v7, %s2306_s9  ;;  %902 = vrot.lane.b32.xlu0 %v2385_v1, %s2305_s8 }
  0x4c   : > { %996 = vrot.lane.b32.xlu1 %v2385_v1, %s2306_s9  ;;  %1000 = vrot.lane.b32.xlu0 %v992_v11, %s2306_s9 }
  0x92   : > { %v222_v14 = vpop.permute.xlu1 %221  ;;  %v238_v15 = vpop.permute.xlu0 %237 }
  0x96   : > { %v218_v17 = vpop.permute.xlu1 %217  ;;  %v234_v18 = vpop.permute.xlu0 %233 }
  0x9a   : > { %v412_v21 = vpop.permute.xlu1 %411  ;;  %v408_v22 = vpop.permute.xlu0 %407 }
  0x9e   : > { %v220_v25 = vpop.permute.xlu1 %219  ;;  %v236_v26 = vpop.permute.xlu0 %235 }
  0x9f   : > { %v224_v27 = vsel %vm223_vm0, %v218_v17, %v220_v25  ;;  %v241_v28 = vsel %vm239_vm1, %v236_v26, %v238_v15  ;;  %v240_v29 = vsel %vm239_vm1, %v234_v18, %v236_v26  ;;  %v225_v30 = vsel %vm223_vm0, %v220_v25, %v222_v14 }
  0xa0   : > { %2104 = vmatprep.subr.msk.mxu0 %vm246_vm2, %v241_v28  ;;  %v229_v32 = vsel %vm2424_vm3, %v225_v30, 0.0  ;;  %v228_v33 = vsel %vm2428_vm4, %v224_v27, 0.0 }
  0xa1   : > { %2105 = vmatpush1.msk.msra.mxu0 %vm246_vm2, %v240_v29  ;;  %2107 = vmatprep.subr.msk.mxu1 %vm246_vm2, %v229_v32 }
  0xa2   : > { %2108 = vmatpush1.msk.msra.mxu1 %vm246_vm2, %v228_v33  ;;  %v512_v37 = vpop.permute.xlu1 %511  ;;  %v410_v38 = vpop.permute.xlu0 %409  ;;  %2106 = vmatmul.mubr.msk.f32.vlgmr.msra.gmra.mxu0 %vm242_vm5, %v2103_v31 }
  0xa3   : > { %v414_v39 = vsel %vm413_vm6, %v408_v22, %v410_v38  ;;  %v415_v40 = vsel %vm413_vm6, %v410_v38, %v412_v21  ;;  %2109 = vmatmul.mubr.msk.f32.vlgmr.msra.gmra.mxu1 %vm242_vm5, %v230_v34  ;;  %495 = vmatprep.mubr.f32.mxu0 %v2298_v0 }
  0xa4   : > { %v418_v41 = vsel %vm2449_vm7, %v414_v39, 0.0  ;;  %v419_v42 = vsel %vm2453_vm8, %v415_v40, 0.0  ;;  %597 = vmatprep.mubr.f32.mxu1 %v2298_v0 }
  0xa5   : > { %2111 = vmatprep.subr.msk.mxu0 %vm246_vm2, %v419_v42 }
  0xa6   : > { %v510_v44 = vpop.permute.xlu1 %509  ;;  %2112 = vmatpush1.msk.msra.mxu0 %vm246_vm2, %v418_v41  ;;  %v514_v45 = vpop.permute.xlu0 %513 }
  0xa7   : > { %v516_v46 = vsel %vm515_vm9, %v510_v44, %v512_v37  ;;  %v517_v47 = vsel %vm515_vm9, %v512_v37, %v514_v45  ;;  %2113 = vmatmul.mubr.msk.f32.vlgmr.msra.gmra.mxu0 %vm242_vm5, %v2110_v43  ;;  %2119 = vmatprep.subr.msk.mxu0 %vm246_vm2, %v2402_v7 }
  0xa8   : > { %v520_v48 = vsel %vm2428_vm4, %v516_v46, 0.0  ;;  %v521_v49 = vsel %vm2424_vm3, %v517_v47, 0.0  ;;  %2120 = vmatpush1.msk.msra.mxu0 %vm246_vm2, %v2385_v1  ;;  %682 = vmatprep.mubr.f32.mxu0 %v2298_v0 }
  0xa9   : > { %2115 = vmatprep.subr.msk.mxu1 %vm246_vm2, %v521_v49 }
  0xaa   : > { %v701_v52 = vpop.permute.xlu1 %700  ;;  %2116 = vmatpush1.msk.msra.mxu1 %vm246_vm2, %v520_v48  ;;  %v699_v53 = vpop.permute.xlu0 %698 }
  0xab   : > { %v704_v54 = vsel %vm702_vm10, %v699_v53, %v701_v52  ;;  %2117 = vmatmul.mubr.msk.f32.vlgmr.msra.gmra.mxu1 %vm242_vm5, %v2114_v50  ;;  %2121 = vmatmul.mubr.msk.f32.vlgmr.msra.gmra.mxu0 %vm242_vm5, %v2118_v51 }
  0xac   : > { %v708_v55 = vsel %vm2453_vm8, %v704_v54, 0.0  ;;  %784 = vmatprep.mubr.f32.mxu1 %v2298_v0  ;;  %886 = vmatprep.mubr.f32.mxu0 %v2298_v0 }
  0xad   : > { %2123 = vmatprep.subr.msk.mxu1 %vm246_vm2, %v708_v55 }
  0xae   : > { %v801_v56 = vpop.permute.xlu1 %800  ;;  %v697_v57 = vpop.permute.xlu0 %696 }
  0xaf   : > { %v703_v58 = vsel %vm702_vm10, %v697_v57, %v699_v53 }
  0xb0   : > { %v707_v60 = vsel %vm2449_vm7, %v703_v58, 0.0 }
  0xb1   : > { %2124 = vmatpush1.msk.msra.mxu1 %vm246_vm2, %v707_v60 }
  0xb2   : > { %v799_v61 = vpop.permute.xlu1 %798  ;;  %v803_v62 = vpop.permute.xlu0 %802  ;;  %2125 = vmatmul.mubr.msk.f32.vlgmr.msra.gmra.mxu1 %vm242_vm5, %v2122_v59 }
  0xb3   : > { %v805_v63 = vsel %vm804_vm11, %v799_v61, %v801_v56  ;;  %v806_v2 = vsel %vm804_vm11, %v801_v56, %v803_v62  ;;  %982 = vmatprep.mubr.f32.mxu1 %v2298_v0 }
  0xb4   : > { %v809_v3 = vsel %vm2428_vm4, %v805_v63, 0.0  ;;  %v810_v4 = vsel %vm2424_vm3, %v806_v2, 0.0 }
  0xb5   : > { %2127 = vmatprep.subr.msk.mxu0 %vm246_vm2, %v810_v4 }
  0xb6   : > { %v907_v6 = vpop.permute.xlu1 %906  ;;  %2128 = vmatpush1.msk.msra.mxu0 %vm246_vm2, %v809_v3  ;;  %v905_v8 = vpop.permute.xlu0 %904 }
  0xb7   : > { %v910_v9 = vsel %vm908_vm12, %v905_v8, %v907_v6  ;;  %2129 = vmatmul.mubr.msk.f32.vlgmr.msra.gmra.mxu0 %vm242_vm5, %v2126_v5 }
  0xb8   : > { %2131 = vmatprep.subr.msk.mxu1 %vm246_vm2, %v910_v9  ;;  %1084 = vmatprep.mubr.f32.mxu0 %v2298_v0 }
  0xba   : > { %v999_v10 = vpop.permute.xlu1 %998  ;;  %v903_v11 = vpop.permute.xlu0 %902 }
  0xbb   : > { %v909_v13 = vsel %vm908_vm12, %v903_v11, %v905_v8  ;;  %v1696_v11 = vld [vmem:[#allocation2 + $0xc] sm:$0xf] }
  0xbc   : > { %2132 = vmatpush1.msk.msra.mxu1 %vm246_vm2, %v909_v13 }
  0xbd   : > { %2133 = vmatmul.mubr.msk.f32.vlgmr.msra.gmra.mxu1 %vm242_vm5, %v2130_v12  ;;  %v1797_v12 = vld [vmem:[#allocation2 + $0xc] sm:$0xf] }
  0xbe   : > { %v997_v14 = vpop.permute.xlu1 %996  ;;  %v1001_v15 = vpop.permute.xlu0 %1000  ;;  %1220 = vmatprep.mubr.f32.mxu1 %v2298_v0 }
  0xbf   : > { %v1003_v16 = vsel %vm1002_vm13, %v997_v14, %v999_v10  ;;  %v1004_v17 = vsel %vm1002_vm13, %v999_v10, %v1001_v15  ;;  %v1595_v10 = vld [vmem:[#allocation2 + $0xc] sm:$0xf] }
  0xc0   : > { %v1007_v18 = vsel %vm2449_vm7, %v1003_v16, 0.0  ;;  %v1008_v19 = vsel %vm2453_vm8, %v1004_v17, 0.0 }
  0xc1   : > { %2135 = vmatprep.subr.msk.mxu0 %vm246_vm2, %v1008_v19 }
  0xc2   : > { %2136 = vmatpush1.msk.msra.mxu0 %vm246_vm2, %v1007_v18 }
  0xc3   : > { %2137 = vmatmul.mubr.msk.f32.vlgmr.msra.gmra.mxu0 %vm242_vm5, %v2134_v20 }
  0xc4   : > { %1300 = vmatprep.mubr.f32.mxu0 %v2298_v0 }
 0x162   : > { %v317_v21 = vpop.f32.mrf.mxu0 }
 0x163   : > { %v397_v25 = vpop.f32.mrf.mxu1 }
 0x164   : > { %v319_v22 = vpop.f32.mrf.mxu0  ;;  %v398_v28 = vadd.f32 %v397_v25, %v317_v21 }
 0x165   : > { %v399_v26 = vpop.f32.mrf.mxu1 }
 0x166   : > { %v400_v29 = vadd.f32 %v399_v26, %v319_v22 }
 0x167   : > { %v497_v27 = vpop.f32.mrf.mxu0 }
 0x168   : > { %v502_v32 = vadd.f32 %v497_v27, %v398_v28 }
 0x169   : > { %v499_v30 = vpop.f32.mrf.mxu0 }
 0x16a   : > { %v503_v33 = vadd.f32 %v499_v30, %v400_v29  ;;  %v1892_v30 = vld [vmem:[#allocation2 + $0xc] sm:$0xf] }
 0x16b   : > { %v599_v31 = vpop.f32.mrf.mxu1  ;;  %v684_v37 = vpop.f32.mrf.mxu0 }
 0x16c   : > { %v604_v38 = vadd.f32 %v599_v31, %v502_v32 }
 0x16d   : > { %v601_v34 = vpop.f32.mrf.mxu1  ;;  %v686_v40 = vpop.f32.mrf.mxu0 }
 0x16e   : > { %v605_v39 = vadd.f32 %v601_v34, %v503_v33  ;;  %v689_v42 = vadd.f32 %v684_v37, %v604_v38 }
 0x170   : > { %v690_v43 = vadd.f32 %v686_v40, %v605_v39 }
 0x172   : > { %v786_v41 = vpop.f32.mrf.mxu1 }
 0x173   : > { %v791_v46 = vadd.f32 %v786_v41, %v689_v42 }
 0x174   : > { %v788_v44 = vpop.f32.mrf.mxu1 }
 0x175   : > { %v792_v47 = vadd.f32 %v788_v44, %v690_v43 }
 0x177   : > { %v888_v45 = vpop.f32.mrf.mxu0 }
 0x178   : > { %v893_v50 = vadd.f32 %v888_v45, %v791_v46 }
 0x179   : > { %v890_v48 = vpop.f32.mrf.mxu0 }
 0x17a   : > { %v894_v51 = vadd.f32 %v890_v48, %v792_v47 }
 0x17d   : > { %v984_v49 = vpop.f32.mrf.mxu1 }
 0x17e   : > { %v989_v53 = vadd.f32 %v984_v49, %v893_v50  ;;  %v2138_v50 = vld [vmem:[%s2734_s2 + $0x4] sm:$0xf] }
 0x17f   : > { %v986_v52 = vpop.f32.mrf.mxu1 }
 0x180   : > { %v990_v55 = vadd.f32 %v986_v52, %v894_v51 }
 0x183   : > { %v1086_v54 = vpop.f32.mrf.mxu0 }
 0x184   : > { %v1091_v56 = vadd.f32 %v1086_v54, %v989_v53 }
 0x185   : > { %v1088_v57 = vpop.f32.mrf.mxu0 }
 0x186   : > { %v1092_v58 = vadd.f32 %v1088_v57, %v990_v55  ;;  %v1093_v59 = vsel %vm246_vm2, %v1091_v56, 0.0 }
 0x188   : > { %v1094_v60 = vsel %vm246_vm2, %v1092_v58, 0.0 }
 0x189   : > { %v1095_v61 = vadd.f32 %v1094_v60, %v1093_v59  ;;  %v1138_v59 = vld [vmem:[%s2734_s2] sm:$0xf] }
 0x18b   : > { %1096 = vadd.xlane.f32.xlu0 %v1095_v61 }
 0x1a1   : > { %1704 = vrot.lane.b32.xlu0 %v1696_v11, %s2304_s7 }
 0x214   : > { %v1097_v62 = vpop.xlane.xlu0 %1096 }
 0x215   : > { %v1099_v63 = vmul.f32 0.00390625, %v1097_v62 }
 0x217   : > { %v1100_v2 = vsub.f32 %v1091_v56, %v1099_v63  ;;  %v1101_v3 = vsub.f32 %v1092_v58, %v1099_v63 }
 0x218   : > { %v1705_v33 = vpop.permute.xlu0 %1704 }
 0x219   : > { %v1102_v4 = vmul.f32 %v1100_v2, %v1100_v2  ;;  %v1103_v5 = vmul.f32 %v1101_v3, %v1101_v3 }
 0x21b   : > { %v1104_v6 = vsel %vm246_vm2, %v1102_v4, 0.0  ;;  %v1105_v8 = vsel %vm246_vm2, %v1103_v5, 0.0 }
 0x21c   : > { %v1106_v9 = vadd.f32 %v1105_v8, %v1104_v6  ;;  %v2145_v6 = vld [vmem:[%s2734_s2 + $0x8] sm:$0xf] }
 0x21e   : > { %1107 = vadd.xlane.f32.xlu1 %v1106_v9  ;;  %v2149_v9 = vld [vmem:[%s2734_s2 + $0xc] sm:$0xf] }
 0x22f   : > { %1603 = vrot.lane.b32.xlu1 %v1595_v10, %s2303_s6 }
 0x233   : > { %1807 = vrot.lane.b32.xlu1 %v1797_v12, %s2305_s8 }
 0x2a7   : > { %v1108_v13 = vpop.xlane.xlu1 %1107 }
 0x2a8   : > { %v1109_v14 = vmul.f32 0.00390625, %v1108_v13 }
 0x2aa   : > { %v1110_v15 = vadd.f32 1e-05, %v1109_v14 }
 0x2ab   : > { %v1604_v31 = vpop.permute.xlu1 %1603 }
 0x2ac   : > { %2231 = vrsqrt.f32 %v1110_v15 }
 0x2af   : > { %v2586_v32 = vpop.permute.xlu1 %1807 }
 0x2b9   : > { %v2232_v16 = vpop.eup %2231 }
 0x2ba   : > { %v1112_v17 = vmul.f32 %v2232_v16, %v1100_v2  ;;  %v1113_v18 = vmul.f32 %v2232_v16, %v1101_v3 }
 0x2bc   : > { %v1114_v19 = vmax.f32 %v1112_v17, 0.0  ;;  %v1115_v20 = vmax.f32 %v1113_v18, 0.0  ;;  %v2153_v18 = vld [vmem:[%s2734_s2 + $0x10] sm:$0xf] }
 0x2be   : > { %v2552_v21 = vcombine.low %v1114_v19, %v1115_v20  ;;  %v2572_v29 = vcombine.low %v1115_v20, %v1115_v20  ;;  %v2157_v19 = vld [vmem:[%s2734_s2 + $0x14] sm:$0xf] }
 0x2c0   : > { %1120 = vst [vmem:[#allocation2 + $0x4] sm:$0xff] %v2552_v21 }
 0x2c7   : > { %v1122_v22 = vld [vmem:[#allocation2 + $0x8] sm:$0xf]  ;;  %v1121_v25 = vld [vmem:[#allocation2] sm:$0xff] }
 0x2c8   : > { %1145 = vrot.lane.b32.xlu1 %v1122_v22, %s2300_s30  ;;  %1141 = vrot.lane.b32.xlu0 %v1121_v25, %s2300_s30  ;;  %v1409_v26 = vld [vmem:[#allocation2 + $0x8] sm:$0xf]  ;;  %v1311_v28 = vcombine.high %v1121_v25, %v1121_v25 }
 0x2c9   : > { %v1308_v27 = vld [vmem:[#allocation2 + $0x8] sm:$0xf] }
 0x2cc   : > { %1130 = vrot.lane.b32.xlu1 %v1122_v22, %s2299_s29  ;;  %1312 = vrot.lane.b32.xlu0 %v1121_v25, %s2301_s4 }
 0x2d0   : > { %1126 = vrot.lane.b32.xlu1 %v1121_v25, %s2299_s29  ;;  %1417 = vrot.lane.b32.xlu0 %v1409_v26, %s2302_s5  ;;  %v2161_v26 = vld [vmem:[%s2734_s2 + $0x18] sm:$0xf] }
 0x2d4   : > { %1316 = vrot.lane.b32.xlu1 %v1308_v27, %s2301_s4  ;;  %1599 = vrot.lane.b32.xlu0 %v2552_v21, %s2303_s6 }
 0x2d8   : > { %1413 = vrot.lane.b32.xlu1 %v1121_v25, %s2302_s5  ;;  %1803 = vrot.lane.b32.xlu0 %v2552_v21, %s2305_s8 }
 0x2dc   : > { %1700 = vrot.lane.b32.xlu1 %v2552_v21, %s2304_s7  ;;  %1143 = vrot.lane.b32.xlu0 %v1311_v28, %s2300_s30 }
 0x2e0   : > { %1415 = vrot.lane.b32.xlu1 %v1311_v28, %s2302_s5  ;;  %1128 = vrot.lane.b32.xlu0 %v1311_v28, %s2299_s29  ;;  %s161_s29 = sand.u32 1, %s2288_s13  }
 0x2e1   : > { %s2100_s30 = sshll.u32 %s161_s29, 3  ;;  %s2023_s27 = scalar_lea.sflag [#allocation4], %s161_s29 }
 0x2e2   : > { %s163_s5 = scalar_lea.vmem [#allocation3], %s2100_s30 }
 0x2e4   : > { %1702 = vrot.lane.b32.xlu1 %v2572_v29, %s2304_s7  ;;  %1314 = vrot.lane.b32.xlu0 %v1311_v28, %s2301_s4  ;;  %v2165_v28 = vld [vmem:[%s2734_s2 + $0x1c] sm:$0xf]  ;;  %s2179_s4 = sshll.u32 %s2349_s16, 7  ;;  %s2307_s16 = smov [#allocation3]  }
 0x2e5   : > { %s2240_s10 = sshll.u32 %s2307_s16, 4  ;;  %s2241_s10 = int_to_ptr.vmem [resolvable:$false] %s2240_s10 }
 0x2e6   : > { %s2242_s11 = scalar_lea.vmem %s2241_s10, 256 }
 0x2e8   : > { %1898 = vrot.lane.b32.xlu1 %v2572_v29, %s2306_s9  ;;  %1601 = vrot.lane.b32.xlu0 %v2572_v29, %s2303_s6  ;;  %s2037_s6 = sshll.u32 %s163_s5, 4  ;;  %s2038_s6 = int_to_ptr.vmem [resolvable:$true] %s2037_s6 }
 0x2e9   : > { %s2236_s28 = scalar_lea.vmem %s2038_s6, 128  ;;  %p2243_p0 = scmp.lt.s32.totalorder %s2038_s6, %s2241_s10 }
 0x2ea   : > { %p2237_p11 = scmp.ne.s32.totalorder %s2038_s6, %s2236_s28  ;;  %p2244_p1 = scmp.lt.s32.totalorder %s2242_s11, %s2236_s28 }
 0x2ec   : > { %1896 = vrot.lane.b32.xlu1 %v2552_v21, %s2306_s9  ;;  %1805 = vrot.lane.b32.xlu0 %v2572_v29, %s2305_s8  ;;  %p2238_p12 = pnand %p2237_p11, %p2366_p5  ;;  %p2245_p2 = por %p2244_p1, %p2243_p0 }
 0x2ee   : > { %p2239_p13 = pneg %p2238_p12 }
 0x2f0   : > { %1900 = vrot.lane.b32.xlu0 %v1892_v30, %s2306_s9  ;;  %s2035_s9 = scalar_lea.hbm %s2735_s3, %s2179_s4  ;;  %p2246_p3 = pnand %p2245_p2, %p2239_p13 }
 0x33a   : > { %v1146_v34 = vpop.permute.xlu1 %1145  ;;  %v1142_v37 = vpop.permute.xlu0 %1141 }
 0x33e   : > { %v1131_v38 = vpop.permute.xlu1 %1130  ;;  %v1313_v39 = vpop.permute.xlu0 %1312 }
 0x342   : > { %v1127_v40 = vpop.permute.xlu1 %1126  ;;  %v1418_v41 = vpop.permute.xlu0 %1417 }
 0x346   : > { %v1317_v42 = vpop.permute.xlu1 %1316  ;;  %v1600_v43 = vpop.permute.xlu0 %1599 }
 0x34a   : > { %v1414_v44 = vpop.permute.xlu1 %1413  ;;  %v1804_v45 = vpop.permute.xlu0 %1803 }
 0x34e   : > { %v1701_v46 = vpop.permute.xlu1 %1700  ;;  %v1144_v47 = vpop.permute.xlu0 %1143 }
 0x34f   : > { %v1147_v48 = vsel %vm239_vm1, %v1142_v37, %v1144_v47  ;;  %v1148_v49 = vsel %vm239_vm1, %v1144_v47, %v1146_v34 }
 0x350   : > { %2139 = vmatprep.subr.msk.mxu1 %vm246_vm2, %v1148_v49 }
 0x351   : > { %2140 = vmatpush1.msk.msra.mxu1 %vm246_vm2, %v1147_v48 }
 0x352   : > { %v1416_v51 = vpop.permute.xlu1 %1415  ;;  %v1129_v52 = vpop.permute.xlu0 %1128  ;;  %2141 = vmatmul.mubr.msk.f32.vlgmr.msra.gmra.mxu1 %vm242_vm5, %v2138_v50 }
 0x353   : > { %v1420_v53 = vsel %vm515_vm9, %v1416_v51, %v1418_v41  ;;  %v1132_v54 = vsel %vm223_vm0, %v1127_v40, %v1129_v52  ;;  %v1133_v55 = vsel %vm223_vm0, %v1129_v52, %v1131_v38  ;;  %1399 = vmatprep.mubr.f32.mxu1 %v2298_v0  ;;  %v1419_v58 = vsel %vm515_vm9, %v1414_v44, %v1416_v51 }
 0x354   : > { %v1136_v56 = vsel %vm2428_vm4, %v1132_v54, 0.0  ;;  %v1137_v57 = vsel %vm2424_vm3, %v1133_v55, 0.0  ;;  %v1424_v60 = vsel %vm2424_vm3, %v1420_v53, 0.0  ;;  %v1423_v3 = vsel %vm2428_vm4, %v1419_v58, 0.0 }
 0x355   : > { %2142 = vmatprep.subr.msk.mxu0 %vm246_vm2, %v1137_v57 }
 0x356   : > { %v1703_v61 = vpop.permute.xlu1 %1702  ;;  %2143 = vmatpush1.msk.msra.mxu0 %vm246_vm2, %v1136_v56  ;;  %v1315_v62 = vpop.permute.xlu0 %1314 }
 0x357   : > { %v1318_v63 = vsel %vm413_vm6, %v1313_v39, %v1315_v62  ;;  %v1319_v2 = vsel %vm413_vm6, %v1315_v62, %v1317_v42  ;;  %2150 = vmatprep.subr.msk.mxu0 %vm246_vm2, %v1424_v60  ;;  %2144 = vmatmul.mubr.msk.f32.vlgmr.msra.gmra.mxu0 %vm242_vm5, %v1138_v59  ;;  %v1707_v8 = vsel %vm804_vm11, %v1703_v61, %v1705_v33 }
 0x358   : > { %v1322_v4 = vsel %vm2449_vm7, %v1318_v63, 0.0  ;;  %v1323_v5 = vsel %vm2453_vm8, %v1319_v2, 0.0  ;;  %2151 = vmatpush1.msk.msra.mxu0 %vm246_vm2, %v1423_v3  ;;  %1500 = vmatprep.mubr.f32.mxu0 %v2298_v0  ;;  %v1706_v14 = vsel %vm804_vm11, %v1701_v46, %v1703_v61  ;;  %v1711_v15 = vsel %vm2424_vm3, %v1707_v8, 0.0 }
 0x359   : > { %2146 = vmatprep.subr.msk.mxu1 %vm246_vm2, %v1323_v5  ;;  %v1710_v20 = vsel %vm2428_vm4, %v1706_v14, 0.0 }
 0x35a   : > { %v1899_v10 = vpop.permute.xlu1 %1898  ;;  %2147 = vmatpush1.msk.msra.mxu1 %vm246_vm2, %v1322_v4  ;;  %v1602_v11 = vpop.permute.xlu0 %1601 }
 0x35b   : > { %v1605_v12 = vsel %vm702_vm10, %v1600_v43, %v1602_v11  ;;  %v1606_v13 = vsel %vm702_vm10, %v1602_v11, %v1604_v31  ;;  %2148 = vmatmul.mubr.msk.f32.vlgmr.msra.gmra.mxu1 %vm242_vm5, %v2145_v6  ;;  %2154 = vmatprep.subr.msk.mxu1 %vm246_vm2, %v2572_v29  ;;  %v2169_v31 = vld [vmem:[%s2734_s2 + $0x20] sm:$0xf] }
 0x35c   : > { %v1609_v16 = vsel %vm2449_vm7, %v1605_v12, 0.0  ;;  %v1610_v17 = vsel %vm2453_vm8, %v1606_v13, 0.0  ;;  %2155 = vmatpush1.msk.msra.mxu1 %vm246_vm2, %v2552_v21  ;;  %2152 = vmatmul.mubr.msk.f32.vlgmr.msra.gmra.mxu0 %vm242_vm5, %v2149_v9 }
 0x35d   : > { %2158 = vmatprep.subr.msk.mxu0 %vm246_vm2, %v1610_v17  ;;  %2162 = vmatprep.subr.msk.mxu1 %vm246_vm2, %v1711_v15 }
 0x35e   : > { %1585 = vmatprep.mubr.f32.mxu1 %v2298_v0  ;;  %2159 = vmatpush1.msk.msra.mxu0 %vm246_vm2, %v1609_v16  ;;  %v1806_v23 = vpop.permute.xlu0 %1805  ;;  %v1897_v21 = vpop.permute.xlu1 %1896 }
 0x35f   : > { %v1809_v22 = vsel %vm908_vm12, %v1804_v45, %v1806_v23  ;;  %v1810_v25 = vsel %vm908_vm12, %v1806_v23, %v2586_v32  ;;  %2156 = vmatmul.mubr.msk.f32.vlgmr.msra.gmra.mxu1 %vm242_vm5, %v2153_v18  ;;  %1686 = vmatprep.mubr.f32.mxu0 %v2298_v0  ;;  %v1902_v24 = vsel %vm1002_vm13, %v1897_v21, %v1899_v10 }
 0x360   : > { %2163 = vmatpush1.msk.msra.mxu1 %vm246_vm2, %v1710_v20  ;;  %2166 = vmatprep.subr.msk.mxu0 %vm246_vm2, %v1810_v25  ;;  %v1906_v32 = vsel %vm2449_vm7, %v1902_v24, 0.0 }
 0x361   : > { %2160 = vmatmul.mubr.msk.f32.vlgmr.msra.gmra.mxu0 %vm242_vm5, %v2157_v19  ;;  %1787 = vmatprep.mubr.f32.mxu1 %v2298_v0 }
 0x362   : > { %2167 = vmatpush1.msk.msra.mxu0 %vm246_vm2, %v1809_v22  ;;  %v1901_v27 = vpop.permute.xlu0 %1900  ;;  %1882 = vmatprep.mubr.f32.mxu0 %v2298_v0 }
 0x363   : > { %v1903_v29 = vsel %vm1002_vm13, %v1899_v10, %v1901_v27  ;;  %2164 = vmatmul.mubr.msk.f32.vlgmr.msra.gmra.mxu1 %vm242_vm5, %v2161_v26 }
 0x364   : > { %v1907_v30 = vsel %vm2453_vm8, %v1903_v29, 0.0  ;;  %1983 = vmatprep.mubr.f32.mxu1 %v2298_v0 }
 0x365   : > { %2168 = vmatmul.mubr.msk.f32.vlgmr.msra.gmra.mxu0 %vm242_vm5, %v2165_v28  ;;  %2170 = vmatprep.subr.msk.mxu1 %vm246_vm2, %v1907_v30 }
 0x366   : > { %2171 = vmatpush1.msk.msra.mxu1 %vm246_vm2, %v1906_v32 }
 0x367   : > { %2172 = vmatmul.mubr.msk.f32.vlgmr.msra.gmra.mxu1 %vm242_vm5, %v2169_v31 }
 0x412   : > { %v1222_v33 = vpop.f32.mrf.mxu1 }
 0x414   : > { %v1224_v34 = vpop.f32.mrf.mxu1 }
 0x417   : > { %v1302_v36 = vpop.f32.mrf.mxu0 }
 0x418   : > { %v1303_v37 = vadd.f32 %v1302_v36, %v1222_v33 }
 0x419   : > { %v1304_v0 = vpop.f32.mrf.mxu0 }
 0x41a   : > { %v1305_v39 = vadd.f32 %v1304_v0, %v1224_v34 }
 0x41b   : > { %v1401_v38 = vpop.f32.mrf.mxu1 }
 0x41c   : > { %v1406_v40 = vadd.f32 %v1401_v38, %v1303_v37  ;;  %v1502_v41 = vpop.f32.mrf.mxu0 }
 0x41d   : > { %v1403_v42 = vpop.f32.mrf.mxu1 }
 0x41e   : > { %v1407_v35 = vadd.f32 %v1403_v42, %v1305_v39  ;;  %v1507_v43 = vadd.f32 %v1502_v41, %v1406_v40  ;;  %v1504_v44 = vpop.f32.mrf.mxu0 }
 0x41f   : > { %v1587_v45 = vpop.f32.mrf.mxu1 }
 0x420   : > { %v1508_v46 = vadd.f32 %v1504_v44, %v1407_v35  ;;  %v1592_v47 = vadd.f32 %v1587_v45, %v1507_v43 }
 0x421   : > { %v1589_v48 = vpop.f32.mrf.mxu1  ;;  %v1688_v49 = vpop.f32.mrf.mxu0 }
 0x422   : > { %v1593_v50 = vadd.f32 %v1589_v48, %v1508_v46  ;;  %v1693_v51 = vadd.f32 %v1688_v49, %v1592_v47 }
 0x423   : > { %v1690_v52 = vpop.f32.mrf.mxu0  ;;  %v1789_v53 = vpop.f32.mrf.mxu1 }
 0x424   : > { %v1694_v54 = vadd.f32 %v1690_v52, %v1593_v50  ;;  %v1794_v55 = vadd.f32 %v1789_v53, %v1693_v51 }
 0x425   : > { %v1791_v56 = vpop.f32.mrf.mxu1  ;;  %v1884_v57 = vpop.f32.mrf.mxu0 }
 0x426   : > { %v1795_v58 = vadd.f32 %v1791_v56, %v1694_v54  ;;  %v1889_v59 = vadd.f32 %v1884_v57, %v1794_v55 }
 0x427   : > { %v1886_v60 = vpop.f32.mrf.mxu0  ;;  %v1985_v61 = vpop.f32.mrf.mxu1 }
 0x428   : > { %v1890_v62 = vadd.f32 %v1886_v60, %v1795_v58  ;;  %v1990_v63 = vadd.f32 %v1985_v61, %v1889_v59 }
 0x429   : > { %v1987_v2 = vpop.f32.mrf.mxu1 }
 0x42a   : > { %v1991_v3 = vadd.f32 %v1987_v2, %v1890_v62  ;;  %v1992_v4 = vsel %vm246_vm2, %v1990_v63, 0.0 }
 0x42c   : > { %v1993_v5 = vsel %vm246_vm2, %v1991_v3, 0.0 }
 0x42d   : > { %v1994_v6 = vadd.f32 %v1993_v5, %v1992_v4 }
 0x42f   : > { %1995 = vadd.xlane.f32.xlu0 %v1994_v6 }
 0x4b8   : > { %v1996_v8 = vpop.xlane.xlu0 %1995 }
 0x4b9   : > { %v1997_v9 = vmul.f32 0.00390625, %v1996_v8 }
 0x4bb   : > { %v1998_v10 = vsub.f32 %v1990_v63, %v1997_v9  ;;  %v1999_v11 = vsub.f32 %v1991_v3, %v1997_v9 }
 0x4bd   : > { %v2000_v12 = vmul.f32 %v1998_v10, %v1998_v10  ;;  %v2001_v13 = vmul.f32 %v1999_v11, %v1999_v11 }
 0x4bf   : > { %v2002_v14 = vsel %vm246_vm2, %v2000_v12, 0.0  ;;  %v2003_v15 = vsel %vm246_vm2, %v2001_v13, 0.0 }
 0x4c0   : > { %v2004_v16 = vadd.f32 %v2003_v15, %v2002_v14 }
 0x4c2   : > { %2005 = vadd.xlane.f32.xlu1 %v2004_v16 }
 0x54b   : > { %v2006_v17 = vpop.xlane.xlu1 %2005 }
 0x54c   : > { %v2007_v18 = vmul.f32 0.00390625, %v2006_v17 }
 0x54e   : > { %v2008_v23 = vadd.f32 1e-05, %v2007_v18 }
 0x550   : > { %2233 = vrsqrt.f32 %v2008_v23 }
 0x55d   : > { %v2234_v19 = vpop.eup %2233 }
 0x55e   : > { %v2010_v20 = vmul.f32 %v2234_v19, %v1998_v10  ;;  %v2011_v21 = vmul.f32 %v2234_v19, %v1999_v11 }
 0x560   : > { %v2015_v22 = vadd.f32 %v2010_v20, %v2385_v1  ;;  %v2016_v25 = vadd.f32 %v2011_v21, %v2402_v7 }
 0x562   : > { %v2019_v26 = vcombine.low %v2015_v22, %v2016_v25 }
 0x564   : > { %2021 = vst [vmem:[%s163_s5] sm:$0xff] %v2019_v26 }
 0x565   : > { %2249 = shalt.err (!%p2246_p3)
}
 0x566   : > { %s2250_s17 = scalar_lea.hbm %s2035_s9, 128  ;;  %s2254_s24 = scalar_lea.hbm %s2735_s3, 256 }
 0x567   : > { %p2251_p4 = scmp.ne.s32.totalorder %s2035_s9, %s2250_s17  ;;  %p2255_p9 = scmp.lt.s32.totalorder %s2035_s9, %s2735_s3 }
 0x568   : > { %p2256_p10 = scmp.lt.s32.totalorder %s2254_s24, %s2250_s17 }
 0x569   : > { %p2252_p7 = pnand %p2251_p4, %p2366_p5 }
 0x56a   : > { %p2257_p11 = por %p2256_p10, %p2255_p9 }
 0x56b   : > { %p2253_p8 = pneg %p2252_p7 }
 0x56d   : > { %p2258_p12 = pnand %p2257_p11, %p2253_p8 }
 0x56f   : > { %2261 = shalt.err (!%p2258_p12)
}
 0x570   : > { %2180 = dma.vmem_to_hbm [thread:$0]  (%p2366_p5), %s2038_s6, 128, %s2035_s9, %s2023_s27  }
 0x571 PF: > { %p2186_p13 = scmp.ge.s32.totalorder %s2296_s15, 2  ;;  %s2049_s29 = sand.u32 1, %s2284_s12  }
 0x572   : > { %s2050_s30 = scalar_lea.sflag [#allocation4], %s2049_s29 }
 0x573   : > { %p2183_p0 = pnand %p2186_p13, %p2370_p6 }
 0x575   : > { %p2184_p1 = pneg %p2183_p0 }
 0x577   : > { %2279 = dma.done.wait (%p2184_p1), %s2050_s30, 128  }
 0x578   : > { %2281 = vsyncadd (%p2184_p1), %s2050_s30, 4294967168  ;;  %p13_p2 = scmp.ge.s32.totalorder %s2353_s18, 4   ;;  %s2746_s12 = smov %s2288_s13 }
 0x579   : > { %s2747_s13 = smov %s2292_s14  ;;  %s2748_s14 = smov %s2364_s21 }
 0x57a   : > { %s2749_s15 = smov %s2353_s18  ;;  %15 = sbr.rel (!%p13_p2) target bundleno = 3 (0x3), region = 83 }
 0x57f   :  { %2055 = vsyncpa [#allocation4], 1 }
 0x580   :  { %2057 = vsyncpa [#allocation4 + $0x1], 1 }

</bundles_post_ra>
